<compile_context>
chip_gen: v6e
topology: v6e:2x2x1
jax: 0.10.0
libtpu: 0.0.40
codegen_flags: <defaults>
</compile_context>

<pallas_src>
import functools

import jax
import jax.numpy as jnp
from jax.experimental import pallas as pl
from jax.experimental.pallas import tpu as pltpu  # noqa: F401  (TPU backend / kept for parity)


# ---------------------------------------------------------------------------
# Pallas kernels (fused)
# ---------------------------------------------------------------------------

def _conv_bn_relu_kernel(w_ref, p_ref, o_ref, *, eps):
    """Fused conv (single im2col matmul) + training-mode BatchNorm + ReLU.

    w_ref: (Cout, K)   flattened conv weight, K = KD*KH*KW*Cin
    p_ref: (K, M)      im2col patches^T, M = N * spatial  (lane-dense)
    o_ref: (Cout, M)   normalized + ReLU'd output (lane-dense last dim)
    """
    y = jnp.dot(w_ref[...], p_ref[...], preferred_element_type=jnp.float32)
    mean = jnp.mean(y, axis=1, keepdims=True)                # per-channel batch mean
    var = jnp.mean((y - mean) ** 2, axis=1, keepdims=True)   # biased variance
    o_ref[...] = jnp.maximum((y - mean) * jax.lax.rsqrt(var + eps), 0.0)


def _head_kernel(x_ref, w_ref, b_ref, s_ref, p_ref, *, eps):
    """Fused head: 1x1 conv + bias + BatchNorm + softmax over classes.

    x_ref: (Cin, M)  activations^T, w_ref: (ncls, Cin), b_ref: (ncls, 1)
    s_ref: (ncls, M) BN'd scores S ; p_ref: (ncls, M) softmax probabilities
    """
    y = jnp.dot(w_ref[...], x_ref[...], preferred_element_type=jnp.float32) + b_ref[...]
    mean = jnp.mean(y, axis=1, keepdims=True)
    var = jnp.mean((y - mean) ** 2, axis=1, keepdims=True)
    s = (y - mean) * jax.lax.rsqrt(var + eps)
    s_ref[...] = s
    m = jnp.max(s, axis=0, keepdims=True)          # softmax over the class (row) axis
    e = jnp.exp(s - m)
    p_ref[...] = e * pl.reciprocal(jnp.sum(e, axis=0, keepdims=True), approx=True)


# ---------------------------------------------------------------------------
# Plain-JAX glue: im2col layout, padding, BN stats of raw/bridge tensors
# ---------------------------------------------------------------------------
# TODO(synk): im2col patch layout, zero padding, the torch transpose/view bridge and the
# input/bridge BatchNorm statistics stay as tiny plain-JAX data-movement glue.

def _im2col_3d_T(x_ndhwc, KD, KH, KW):
    """Return patches^T of shape (KD*KH*KW*Cin, N*D*H*W) for a 'same' conv3d."""
    N, D, H, W, C = x_ndhwc.shape
    pd, ph, pw = (KD - 1) // 2, (KH - 1) // 2, (KW - 1) // 2
    xp = jnp.pad(x_ndhwc, ((0, 0), (pd, pd), (ph, ph), (pw, pw), (0, 0)))
    taps = []
    for kd in range(KD):
        for kh in range(KH):
            for kw in range(KW):
                taps.append(xp[:, kd:kd + D, kh:kh + H, kw:kw + W, :])
    p = jnp.stack(taps, axis=0)                     # (Ktaps, N, D, H, W, C)
    p = jnp.transpose(p, (0, 5, 1, 2, 3, 4))        # (Ktaps, C, N, D, H, W)
    return p.reshape(KD * KH * KW * C, N * D * H * W)


def _im2col_2d_T(x_nhwc, KH, KW):
    """Return patches^T of shape (KH*KW*Cin, N*H*W) for a 'same' conv2d."""
    N, H, W, C = x_nhwc.shape
    ph, pw = (KH - 1) // 2, (KW - 1) // 2
    xp = jnp.pad(x_nhwc, ((0, 0), (ph, ph), (pw, pw), (0, 0)))
    taps = [xp[:, kh:kh + H, kw:kw + W, :] for kh in range(KH) for kw in range(KW)]
    p = jnp.stack(taps, axis=0)                     # (Ktaps, N, H, W, C)
    p = jnp.transpose(p, (0, 4, 1, 2, 3))           # (Ktaps, C, N, H, W)
    return p.reshape(KH * KW * C, N * H * W)


def batchnorm_train(x, channel_axis=1, eps=1e-5):
    """Fresh nn.BatchNorm{2d,3d} in training mode: batch stats, biased var, gamma=1, beta=0."""
    axes = tuple(i for i in range(x.ndim) if i != channel_axis)
    mean = jnp.mean(x, axis=axes, keepdims=True)
    var = jnp.mean((x - mean) ** 2, axis=axes, keepdims=True)
    return (x - mean) * jax.lax.rsqrt(var + eps)


# ---------------------------------------------------------------------------
# Layer wrappers (Pallas calls)
# ---------------------------------------------------------------------------

def conv3d_bn_relu(x_ndhwc, w_torch, eps=1e-5):
    """conv3d (stride 1, padding [1,1,2] for a (3,3,5) kernel) + BN3d + ReLU, fused."""
    N, D, H, W, cin = x_ndhwc.shape
    cout, _, KD, KH, KW = w_torch.shape
    pT = _im2col_3d_T(x_ndhwc, KD, KH, KW).astype(jnp.float32)          # (K, M)
    wf = jnp.transpose(w_torch, (0, 2, 3, 4, 1)).reshape(
        cout, KD * KH * KW * cin).astype(jnp.float32)                   # (Cout, K)
    M = N * D * H * W
    out_t = pl.pallas_call(
        functools.partial(_conv_bn_relu_kernel, eps=eps),
        out_shape=jax.ShapeDtypeStruct((cout, M), jnp.float32),
    )(wf, pT)                                                           # (Cout, M) lane-dense
    return jnp.transpose(out_t.reshape(cout, N, D, H, W), (1, 2, 3, 4, 0))   # NDHWC


def conv2d_bn_relu(x_nhwc, w_torch, eps=1e-5):
    """conv2d (stride 1, padding 1, 3x3 kernel) + BN2d + ReLU, fused."""
    N, H, W, cin = x_nhwc.shape
    cout, _, KH, KW = w_torch.shape
    pT = _im2col_2d_T(x_nhwc, KH, KW).astype(jnp.float32)               # (K, M)
    wf = jnp.transpose(w_torch, (0, 2, 3, 1)).reshape(
        cout, KH * KW * cin).astype(jnp.float32)                        # (Cout, K)
    M = N * H * W
    out_t = pl.pallas_call(
        functools.partial(_conv_bn_relu_kernel, eps=eps),
        out_shape=jax.ShapeDtypeStruct((cout, M), jnp.float32),
    )(wf, pT)                                                           # (Cout, M) lane-dense
    return jnp.transpose(out_t.reshape(cout, N, H, W), (1, 2, 3, 0))    # NHWC


def head_fused(x_t, kout_torch, biasout, eps=1e-5):
    """1x1 conv + bias + BN2d + softmax-over-classes, one fused kernel.

    x_t: (Cin, M) activations^T.  Returns (S_t, P_t), each (ncls, M).
    """
    cin, M = x_t.shape
    ncls = kout_torch.shape[0]
    w2 = kout_torch[:, :, 0, 0].astype(jnp.float32)                     # (ncls, Cin)
    b2 = biasout.reshape(ncls, 1).astype(jnp.float32)
    return pl.pallas_call(
        functools.partial(_head_kernel, eps=eps),
        out_shape=(jax.ShapeDtypeStruct((ncls, M), jnp.float32),
                   jax.ShapeDtypeStruct((ncls, M), jnp.float32)),
    )(x_t.astype(jnp.float32), w2, b2)


# ---------------------------------------------------------------------------
# Parameters & forward pass
# ---------------------------------------------------------------------------

def init_params(key, netgeometry3d, netgeometry2d, input_depth, n_class):
    scale = 0.01
    params = {"K3d": [], "K2d": []}
    for i in range(len(netgeometry3d) - 1):
        key, k = jax.random.split(key)
        params["K3d"].append(
            jax.random.normal(k, (netgeometry3d[i + 1], netgeometry3d[i], 3, 3, 5),
                              jnp.float32) * scale)
    n_in = netgeometry3d[-1] * input_depth
    for i in range(len(netgeometry2d) - 1):
        n_out = netgeometry2d[i]
        key, k = jax.random.split(key)
        params["K2d"].append(
            jax.random.normal(k, (n_out, n_in, 3, 3), jnp.float32) * scale)
        n_in = n_out
    key, k1 = jax.random.split(key)
    key, k2 = jax.random.split(key)
    params["Kout"] = jax.random.normal(k1, (n_class, n_in, 1, 1), jnp.float32) * scale
    params["biasout"] = jax.random.normal(k2, (n_class,), jnp.float32) * scale
    return params


def convnet_forward(params, X_ncdhw):
    # ---- 3-D stage ----
    X = batchnorm_train(X_ncdhw, channel_axis=1)            # bnorms3d[0]
    x = jnp.transpose(X, (0, 2, 3, 4, 1))                   # NCDHW -> NDHWC
    for Ki in params["K3d"]:
        x = conv3d_bn_relu(x, Ki)                           # fused Pallas conv3d+BN+ReLU

    # ---- exact transpose/reshape bridge from the PyTorch module ----
    Xc = jnp.transpose(x, (0, 4, 1, 2, 3))                  # (N, C3, D, H, W)
    N, C3, D, H, W = Xc.shape
    Xc = jnp.swapaxes(Xc, 3, 4)
    Xc = jnp.swapaxes(Xc, 2, 3)
    X2 = Xc.reshape(N, C3 * D, H, W)                        # (N, C3*input_depth, H, W)

    # ---- 2-D stage ----
    X2 = batchnorm_train(X2, channel_axis=1)                # bnorms2d[0]
    x2 = jnp.transpose(X2, (0, 2, 3, 1))                    # NCHW -> NHWC
    # Mirrors the module: the 2-D zip is truncated by self.bias (length len(K3d)).
    n2d = min(len(params["K2d"]), len(params["K3d"]))
    for Ki in params["K2d"][:n2d]:
        x2 = conv2d_bn_relu(x2, Ki)                         # fused Pallas conv2d+BN+ReLU

    # ---- head: 1x1 conv + bias + bnout + softmax over classes (one fused kernel) ----
    Nn, Hh, Ww, cin = x2.shape
    x2_t = jnp.transpose(x2, (3, 0, 1, 2)).reshape(cin, Nn * Hh * Ww)   # (Cin, M) lane-dense
    S_t, P_t = head_fused(x2_t, params["Kout"], params["biasout"])
    ncls = params["Kout"].shape[0]
    S = jnp.transpose(S_t.reshape(ncls, Nn, Hh, Ww), (1, 0, 2, 3))      # (N, ncls, H, W)
    probs = jnp.transpose(P_t.reshape(ncls, Nn, Hh, Ww), (1, 0, 2, 3))
    return S, probs


# ---------------------------------------------------------------------------

if __name__ == "__main__":
    netgeometry3d = [2, 4, 4]          # 2 conv3d layers
    netgeometry2d = [8, 8]             # 1 conv2d layer (second entry unused, as in the module)
    input_depth, input_height, input_width = 4, 8, 8
    n_class = 3
    batch = 2

    key = jax.random.PRNGKey(0)
    kx, kp = jax.random.split(key)
    X = jax.random.normal(
        kx, (batch, netgeometry3d[0], input_depth, input_height, input_width),
        jnp.float32)
    params = init_params(kp, netgeometry3d, netgeometry2d, input_depth, n_class)

    forward = jax.jit(convnet_forward)
    S, probs = forward(params, X)
    jax.block_until_ready((S, probs))

    assert S.shape == (batch, n_class, input_height, input_width)
    assert probs.shape == (batch, n_class, input_height, input_width)
    assert bool(jnp.all(jnp.isfinite(S))) and bool(jnp.all(jnp.isfinite(probs)))
    print("KERNEL_OK")
</pallas_src>

<mosaic_0001>
module attributes {stable_mosaic.version = 11 : i64} {
  func.func @_conv_bn_relu_kernel(%arg0: memref<4x90xf32, #tpu.memory_space<vmem>>, %arg1: memref<90x512xf32, #tpu.memory_space<vmem>>, %arg2: memref<4x512xf32, #tpu.memory_space<vmem>>) attributes {dimension_semantics = [], scalar_prefetch = 0 : i64, scratch_operands = 0 : i64, tpu.core_type = #tpu.core_type<tc>} {
    %c0 = arith.constant 0 : index
    %c0_0 = arith.constant 0 : index
    %0 = vector.load %arg0[%c0, %c0_0] : memref<4x90xf32, #tpu.memory_space<vmem>>, vector<4x90xf32>
    %c0_1 = arith.constant 0 : index
    %c0_2 = arith.constant 0 : index
    %1 = vector.load %arg1[%c0_1, %c0_2] : memref<90x512xf32, #tpu.memory_space<vmem>>, vector<90x512xf32>
    %cst = arith.constant dense<0.000000e+00> : vector<4x512xf32>
    %2 = tpu.matmul %0, %1, %cst {dimension_numbers = #tpu.dot_dimension_numbers<[1], [0], [0], [1], [0, 0, 1, 1], [], []>} : vector<4x90xf32>, vector<90x512xf32>, vector<4x512xf32> -> vector<4x512xf32>
    %cst_3 = arith.constant dense<0.000000e+00> : vector<4xf32>
    %3 = vector.multi_reduction <add>, %2, %cst_3 [1] : vector<4x512xf32> to vector<4xf32>
    %4 = vector.shape_cast %3 : vector<4xf32> to vector<4x1xf32>
    %cst_4 = arith.constant 5.120000e+02 : f32
    %5 = vector.broadcast %cst_4 : f32 to vector<4x1xf32>
    %6 = arith.divf %4, %5 : vector<4x1xf32>
    %7 = vector.broadcast %6 : vector<4x1xf32> to vector<4x512xf32>
    %8 = arith.subf %2, %7 : vector<4x512xf32>
    %9 = arith.mulf %8, %8 : vector<4x512xf32>
    %cst_5 = arith.constant dense<0.000000e+00> : vector<4xf32>
    %10 = vector.multi_reduction <add>, %9, %cst_5 [1] : vector<4x512xf32> to vector<4xf32>
    %11 = vector.shape_cast %10 : vector<4xf32> to vector<4x1xf32>
    %cst_6 = arith.constant 5.120000e+02 : f32
    %12 = vector.broadcast %cst_6 : f32 to vector<4x1xf32>
    %13 = arith.divf %11, %12 : vector<4x1xf32>
    %14 = vector.broadcast %6 : vector<4x1xf32> to vector<4x512xf32>
    %15 = arith.subf %2, %14 : vector<4x512xf32>
    %cst_7 = arith.constant 9.99999974E-6 : f32
    %16 = vector.broadcast %cst_7 : f32 to vector<4x1xf32>
    %17 = arith.addf %13, %16 : vector<4x1xf32>
    %18 = math.rsqrt %17 : vector<4x1xf32>
    %19 = vector.broadcast %18 : vector<4x1xf32> to vector<4x512xf32>
    %20 = arith.mulf %15, %19 : vector<4x512xf32>
    %cst_8 = arith.constant 0.000000e+00 : f32
    %21 = vector.broadcast %cst_8 : f32 to vector<4x512xf32>
    %22 = arith.maximumf %20, %21 : vector<4x512xf32>
    %c0_9 = arith.constant 0 : index
    %c0_10 = arith.constant 0 : index
    %23 = vector.load %arg2[%c0_9, %c0_10] : memref<4x512xf32, #tpu.memory_space<vmem>>, vector<4x512xf32>
    tpu.vector_store %arg2[%c0_9, %c0_10], %22 {strides = array<i32>} : memref<4x512xf32, #tpu.memory_space<vmem>>, vector<4x512xf32>,
    return
  }
}

module attributes {stable_mosaic.version = 11 : i64} {
  func.func @_conv_bn_relu_kernel(%arg0: memref<4x180xf32, #tpu.memory_space<vmem>>, %arg1: memref<180x512xf32, #tpu.memory_space<vmem>>, %arg2: memref<4x512xf32, #tpu.memory_space<vmem>>) attributes {dimension_semantics = [], scalar_prefetch = 0 : i64, scratch_operands = 0 : i64, tpu.core_type = #tpu.core_type<tc>} {
    %c0 = arith.constant 0 : index
    %c0_0 = arith.constant 0 : index
    %0 = vector.load %arg0[%c0, %c0_0] : memref<4x180xf32, #tpu.memory_space<vmem>>, vector<4x180xf32>
    %c0_1 = arith.constant 0 : index
    %c0_2 = arith.constant 0 : index
    %1 = vector.load %arg1[%c0_1, %c0_2] : memref<180x512xf32, #tpu.memory_space<vmem>>, vector<180x512xf32>
    %cst = arith.constant dense<0.000000e+00> : vector<4x512xf32>
    %2 = tpu.matmul %0, %1, %cst {dimension_numbers = #tpu.dot_dimension_numbers<[1], [0], [0], [1], [0, 0, 1, 1], [], []>} : vector<4x180xf32>, vector<180x512xf32>, vector<4x512xf32> -> vector<4x512xf32>
    %cst_3 = arith.constant dense<0.000000e+00> : vector<4xf32>
    %3 = vector.multi_reduction <add>, %2, %cst_3 [1] : vector<4x512xf32> to vector<4xf32>
    %4 = vector.shape_cast %3 : vector<4xf32> to vector<4x1xf32>
    %cst_4 = arith.constant 5.120000e+02 : f32
    %5 = vector.broadcast %cst_4 : f32 to vector<4x1xf32>
    %6 = arith.divf %4, %5 : vector<4x1xf32>
    %7 = vector.broadcast %6 : vector<4x1xf32> to vector<4x512xf32>
    %8 = arith.subf %2, %7 : vector<4x512xf32>
    %9 = arith.mulf %8, %8 : vector<4x512xf32>
    %cst_5 = arith.constant dense<0.000000e+00> : vector<4xf32>
    %10 = vector.multi_reduction <add>, %9, %cst_5 [1] : vector<4x512xf32> to vector<4xf32>
    %11 = vector.shape_cast %10 : vector<4xf32> to vector<4x1xf32>
    %cst_6 = arith.constant 5.120000e+02 : f32
    %12 = vector.broadcast %cst_6 : f32 to vector<4x1xf32>
    %13 = arith.divf %11, %12 : vector<4x1xf32>
    %14 = vector.broadcast %6 : vector<4x1xf32> to vector<4x512xf32>
    %15 = arith.subf %2, %14 : vector<4x512xf32>
    %cst_7 = arith.constant 9.99999974E-6 : f32
    %16 = vector.broadcast %cst_7 : f32 to vector<4x1xf32>
    %17 = arith.addf %13, %16 : vector<4x1xf32>
    %18 = math.rsqrt %17 : vector<4x1xf32>
    %19 = vector.broadcast %18 : vector<4x1xf32> to vector<4x512xf32>
    %20 = arith.mulf %15, %19 : vector<4x512xf32>
    %cst_8 = arith.constant 0.000000e+00 : f32
    %21 = vector.broadcast %cst_8 : f32 to vector<4x512xf32>
    %22 = arith.maximumf %20, %21 : vector<4x512xf32>
    %c0_9 = arith.constant 0 : index
    %c0_10 = arith.constant 0 : index
    %23 = vector.load %arg2[%c0_9, %c0_10] : memref<4x512xf32, #tpu.memory_space<vmem>>, vector<4x512xf32>
    tpu.vector_store %arg2[%c0_9, %c0_10], %22 {strides = array<i32>} : memref<4x512xf32, #tpu.memory_space<vmem>>, vector<4x512xf32>,
    return
  }
}

module attributes {stable_mosaic.version = 11 : i64} {
  func.func @_conv_bn_relu_kernel(%arg0: memref<8x144xf32, #tpu.memory_space<vmem>>, %arg1: memref<144x128xf32, #tpu.memory_space<vmem>>, %arg2: memref<8x128xf32, #tpu.memory_space<vmem>>) attributes {dimension_semantics = [], scalar_prefetch = 0 : i64, scratch_operands = 0 : i64, tpu.core_type = #tpu.core_type<tc>} {
    %c0 = arith.constant 0 : index
    %c0_0 = arith.constant 0 : index
    %0 = vector.load %arg0[%c0, %c0_0] : memref<8x144xf32, #tpu.memory_space<vmem>>, vector<8x144xf32>
    %c0_1 = arith.constant 0 : index
    %c0_2 = arith.constant 0 : index
    %1 = vector.load %arg1[%c0_1, %c0_2] : memref<144x128xf32, #tpu.memory_space<vmem>>, vector<144x128xf32>
    %cst = arith.constant dense<0.000000e+00> : vector<8x128xf32>
    %2 = tpu.matmul %0, %1, %cst {dimension_numbers = #tpu.dot_dimension_numbers<[1], [0], [0], [1], [0, 0, 1, 1], [], []>} : vector<8x144xf32>, vector<144x128xf32>, vector<8x128xf32> -> vector<8x128xf32>
    %cst_3 = arith.constant dense<0.000000e+00> : vector<8xf32>
    %3 = vector.multi_reduction <add>, %2, %cst_3 [1] : vector<8x128xf32> to vector<8xf32>
    %4 = vector.shape_cast %3 : vector<8xf32> to vector<8x1xf32>
    %cst_4 = arith.constant 1.280000e+02 : f32
    %5 = vector.broadcast %cst_4 : f32 to vector<8x1xf32>
    %6 = arith.divf %4, %5 : vector<8x1xf32>
    %7 = vector.broadcast %6 : vector<8x1xf32> to vector<8x128xf32>
    %8 = arith.subf %2, %7 : vector<8x128xf32>
    %9 = arith.mulf %8, %8 : vector<8x128xf32>
    %cst_5 = arith.constant dense<0.000000e+00> : vector<8xf32>
    %10 = vector.multi_reduction <add>, %9, %cst_5 [1] : vector<8x128xf32> to vector<8xf32>
    %11 = vector.shape_cast %10 : vector<8xf32> to vector<8x1xf32>
    %cst_6 = arith.constant 1.280000e+02 : f32
    %12 = vector.broadcast %cst_6 : f32 to vector<8x1xf32>
    %13 = arith.divf %11, %12 : vector<8x1xf32>
    %14 = vector.broadcast %6 : vector<8x1xf32> to vector<8x128xf32>
    %15 = arith.subf %2, %14 : vector<8x128xf32>
    %cst_7 = arith.constant 9.99999974E-6 : f32
    %16 = vector.broadcast %cst_7 : f32 to vector<8x1xf32>
    %17 = arith.addf %13, %16 : vector<8x1xf32>
    %18 = math.rsqrt %17 : vector<8x1xf32>
    %19 = vector.broadcast %18 : vector<8x1xf32> to vector<8x128xf32>
    %20 = arith.mulf %15, %19 : vector<8x128xf32>
    %cst_8 = arith.constant 0.000000e+00 : f32
    %21 = vector.broadcast %cst_8 : f32 to vector<8x128xf32>
    %22 = arith.maximumf %20, %21 : vector<8x128xf32>
    %c0_9 = arith.constant 0 : index
    %c0_10 = arith.constant 0 : index
    %23 = vector.load %arg2[%c0_9, %c0_10] : memref<8x128xf32, #tpu.memory_space<vmem>>, vector<8x128xf32>
    tpu.vector_store %arg2[%c0_9, %c0_10], %22 {strides = array<i32>} : memref<8x128xf32, #tpu.memory_space<vmem>>, vector<8x128xf32>,
    return
  }
}

module attributes {stable_mosaic.version = 11 : i64} {
  func.func @_head_kernel(%arg0: memref<8x128xf32, #tpu.memory_space<vmem>>, %arg1: memref<3x8xf32, #tpu.memory_space<vmem>>, %arg2: memref<3x1xf32, #tpu.memory_space<vmem>>, %arg3: memref<3x128xf32, #tpu.memory_space<vmem>>, %arg4: memref<3x128xf32, #tpu.memory_space<vmem>>) attributes {dimension_semantics = [], scalar_prefetch = 0 : i64, scratch_operands = 0 : i64, tpu.core_type = #tpu.core_type<tc>} {
    %c0 = arith.constant 0 : index
    %c0_0 = arith.constant 0 : index
    %0 = vector.load %arg1[%c0, %c0_0] : memref<3x8xf32, #tpu.memory_space<vmem>>, vector<3x8xf32>
    %c0_1 = arith.constant 0 : index
    %c0_2 = arith.constant 0 : index
    %1 = vector.load %arg0[%c0_1, %c0_2] : memref<8x128xf32, #tpu.memory_space<vmem>>, vector<8x128xf32>
    %cst = arith.constant dense<0.000000e+00> : vector<3x128xf32>
    %2 = tpu.matmul %0, %1, %cst {dimension_numbers = #tpu.dot_dimension_numbers<[1], [0], [0], [1], [0, 0, 1, 1], [], []>} : vector<3x8xf32>, vector<8x128xf32>, vector<3x128xf32> -> vector<3x128xf32>
    %c0_3 = arith.constant 0 : index
    %c0_4 = arith.constant 0 : index
    %3 = vector.load %arg2[%c0_3, %c0_4] : memref<3x1xf32, #tpu.memory_space<vmem>>, vector<3x1xf32>
    %4 = vector.broadcast %3 : vector<3x1xf32> to vector<3x128xf32>
    %5 = arith.addf %2, %4 : vector<3x128xf32>
    %cst_5 = arith.constant dense<0.000000e+00> : vector<3xf32>
    %6 = vector.multi_reduction <add>, %5, %cst_5 [1] : vector<3x128xf32> to vector<3xf32>
    %7 = vector.shape_cast %6 : vector<3xf32> to vector<3x1xf32>
    %cst_6 = arith.constant 1.280000e+02 : f32
    %8 = vector.broadcast %cst_6 : f32 to vector<3x1xf32>
    %9 = arith.divf %7, %8 : vector<3x1xf32>
    %10 = vector.broadcast %9 : vector<3x1xf32> to vector<3x128xf32>
    %11 = arith.subf %5, %10 : vector<3x128xf32>
    %12 = arith.mulf %11, %11 : vector<3x128xf32>
    %cst_7 = arith.constant dense<0.000000e+00> : vector<3xf32>
    %13 = vector.multi_reduction <add>, %12, %cst_7 [1] : vector<3x128xf32> to vector<3xf32>
    %14 = vector.shape_cast %13 : vector<3xf32> to vector<3x1xf32>
    %cst_8 = arith.constant 1.280000e+02 : f32
    %15 = vector.broadcast %cst_8 : f32 to vector<3x1xf32>
    %16 = arith.divf %14, %15 : vector<3x1xf32>
    %17 = vector.broadcast %9 : vector<3x1xf32> to vector<3x128xf32>
    %18 = arith.subf %5, %17 : vector<3x128xf32>
    %cst_9 = arith.constant 9.99999974E-6 : f32
    %19 = vector.broadcast %cst_9 : f32 to vector<3x1xf32>
    %20 = arith.addf %16, %19 : vector<3x1xf32>
    %21 = math.rsqrt %20 : vector<3x1xf32>
    %22 = vector.broadcast %21 : vector<3x1xf32> to vector<3x128xf32>
    %23 = arith.mulf %18, %22 : vector<3x128xf32>
    %c0_10 = arith.constant 0 : index
    %c0_11 = arith.constant 0 : index
    %24 = vector.load %arg3[%c0_10, %c0_11] : memref<3x128xf32, #tpu.memory_space<vmem>>, vector<3x128xf32>
    tpu.vector_store %arg3[%c0_10, %c0_11], %23 {strides = array<i32>} : memref<3x128xf32, #tpu.memory_space<vmem>>, vector<3x128xf32>,
    %cst_12 = arith.constant dense<0xFF800000> : vector<128xf32>
    %25 = vector.multi_reduction <maximumf>, %23, %cst_12 [0] : vector<3x128xf32> to vector<128xf32>
    %26 = vector.shape_cast %25 : vector<128xf32> to vector<1x128xf32>
    %27 = vector.broadcast %26 : vector<1x128xf32> to vector<3x128xf32>
    %28 = arith.subf %23, %27 : vector<3x128xf32>
    %29 = math.exp %28 : vector<3x128xf32>
    %cst_13 = arith.constant dense<0.000000e+00> : vector<128xf32>
    %30 = vector.multi_reduction <add>, %29, %cst_13 [0] : vector<3x128xf32> to vector<128xf32>
    %31 = vector.shape_cast %30 : vector<128xf32> to vector<1x128xf32>
    %32 = tpu.reciprocal %31 {approx = true} : vector<1x128xf32> -> vector<1x128xf32>
    %33 = vector.broadcast %32 : vector<1x128xf32> to vector<3x128xf32>
    %34 = arith.mulf %29, %33 : vector<3x128xf32>
    %c0_14 = arith.constant 0 : index
    %c0_15 = arith.constant 0 : index
    %35 = vector.load %arg4[%c0_14, %c0_15] : memref<3x128xf32, #tpu.memory_space<vmem>>, vector<3x128xf32>
    tpu.vector_store %arg4[%c0_14, %c0_15], %34 {strides = array<i32>} : memref<3x128xf32, #tpu.memory_space<vmem>>, vector<3x128xf32>,
    return
  }
}

</mosaic_0001>

<bundles_post_ra>
// kernel: convnet_forward.4
= control target key start
LH: loop header
LB: loop body
LE: loop exit
PB: predicated region body
PF: predicated region fallthrough
CT: control target
= control target key end

     0   :  { %vm64_vm0 = vcmask 1041408   ;;  %v282_v3 = vmov 0.0   ;;  %vm60_vm1 = vcmask 736256   ;;  %vm219_vm2 = vcmask 1043456   ;;  %s463_s1 = inlined_call_operand.vmem [shape: f32[90,512], index: 1, kind: input, shape index: {}]   ;;  %s464_s0 = inlined_call_operand.vmem [shape: f32[4,90], index: 0, kind: input, shape index: {}]   ;;  %s465_s2 = inlined_call_operand.vmem [shape: f32[4,512], index: 2, kind: output, shape index: {}]  }
   0x1   :  { %v57_v0 = vld [vmem:[%s463_s1 + $0x168] sm:$0x3]  ;;  %v56_v1 = vld [vmem:[%s463_s1 + $0x160] sm:$0x3]  ;;  %141 = vmatprep.mubr.f32.mxu0 %v282_v3  ;;  %212 = vmatprep.mubr.f32.mxu1 %v282_v3  ;;  %v59_v4 = vld [vmem:[%s463_s1 + $0x178] sm:$0x3] }
   0x2   :  { %v53_v2 = vld [vmem:[%s463_s1 + $0x148] sm:$0xff]  ;;  %273 = vmatprep.subr.msk.mxu0 %vm64_vm0, %v57_v0  ;;  %v52_v5 = vld [vmem:[%s463_s1 + $0x140] sm:$0xff]  ;;  %v58_v6 = vld [vmem:[%s463_s1 + $0x170] sm:$0x3]  ;;  %276 = vmatprep.subr.msk.mxu1 %vm64_vm0, %v59_v4 }
   0x3   :  { %274 = vmatpush1.msk.msra.mxu0 %vm64_vm0, %v56_v1  ;;  %v49_v7 = vld [vmem:[%s463_s1 + $0x128] sm:$0xff]  ;;  %v55_v8 = vld [vmem:[%s463_s1 + $0x158] sm:$0xff]  ;;  %277 = vmatpush1.msk.msra.mxu1 %vm64_vm0, %v58_v6  ;;  %v48_v9 = vld [vmem:[%s463_s1 + $0x120] sm:$0xff] }
   0x4   :  { %87 = vmatprep.subr.mxu0 %v53_v2  ;;  %v54_v10 = vld [vmem:[%s463_s1 + $0x150] sm:$0xff]  ;;  %v51_v11 = vld [vmem:[%s463_s1 + $0x138] sm:$0xff]  ;;  %158 = vmatprep.subr.mxu1 %v55_v8  ;;  %v45_v12 = vld [vmem:[%s463_s1 + $0x108] sm:$0xff] }
   0x5   :  { %88 = vmatpush1.msra.mxu0 %v52_v5  ;;  %v50_v13 = vld [vmem:[%s463_s1 + $0x130] sm:$0xff]  ;;  %159 = vmatpush1.msra.mxu1 %v54_v10  ;;  %v44_v14 = vld [vmem:[%s463_s1 + $0x100] sm:$0xff]  ;;  %v47_v15 = vld [vmem:[%s463_s1 + $0x118] sm:$0xff] }
   0x6   :  { %89 = vmatprep.subr.mxu0 %v49_v7  ;;  %160 = vmatprep.subr.mxu1 %v51_v11  ;;  %v41_v16 = vld [vmem:[%s463_s1 + $0xe8] sm:$0xff]  ;;  %v46_v17 = vld [vmem:[%s463_s1 + $0x110] sm:$0xff]  ;;  %v40_v18 = vld [vmem:[%s463_s1 + $0xe0] sm:$0xff] }
   0x7   :  { %90 = vmatpush1.msra.mxu0 %v48_v9  ;;  %161 = vmatpush1.msra.mxu1 %v50_v13  ;;  %v43_v19 = vld [vmem:[%s463_s1 + $0xf8] sm:$0xff]  ;;  %v37_v20 = vld [vmem:[%s463_s1 + $0xc8] sm:$0xff]  ;;  %v42_v21 = vld [vmem:[%s463_s1 + $0xf0] sm:$0xff] }
   0x8   :  { %91 = vmatprep.subr.mxu0 %v45_v12  ;;  %162 = vmatprep.subr.mxu1 %v47_v15  ;;  %v36_v22 = vld [vmem:[%s463_s1 + $0xc0] sm:$0xff]  ;;  %v39_v23 = vld [vmem:[%s463_s1 + $0xd8] sm:$0xff]  ;;  %v33_v24 = vld [vmem:[%s463_s1 + $0xa8] sm:$0xff] }
   0x9   :  { %92 = vmatpush1.msra.mxu0 %v44_v14  ;;  %163 = vmatpush1.msra.mxu1 %v46_v17  ;;  %v38_v25 = vld [vmem:[%s463_s1 + $0xd0] sm:$0xff]  ;;  %v32_v26 = vld [vmem:[%s463_s1 + $0xa0] sm:$0xff]  ;;  %v35_v27 = vld [vmem:[%s463_s1 + $0xb8] sm:$0xff] }
   0xa   :  { %93 = vmatprep.subr.mxu0 %v41_v16  ;;  %164 = vmatprep.subr.mxu1 %v43_v19  ;;  %v29_v28 = vld [vmem:[%s463_s1 + $0x88] sm:$0xff]  ;;  %v34_v29 = vld [vmem:[%s463_s1 + $0xb0] sm:$0xff]  ;;  %v28_v30 = vld [vmem:[%s463_s1 + $0x80] sm:$0xff] }
   0xb   :  { %94 = vmatpush1.msra.mxu0 %v40_v18  ;;  %165 = vmatpush1.msra.mxu1 %v42_v21  ;;  %v31_v31 = vld [vmem:[%s463_s1 + $0x98] sm:$0xff]  ;;  %v25_v32 = vld [vmem:[%s463_s1 + $0x68] sm:$0xff]  ;;  %v30_v33 = vld [vmem:[%s463_s1 + $0x90] sm:$0xff] }
   0xc   :  { %95 = vmatprep.subr.mxu0 %v37_v20  ;;  %166 = vmatprep.subr.mxu1 %v39_v23  ;;  %v24_v34 = vld [vmem:[%s463_s1 + $0x60] sm:$0xff]  ;;  %v27_v35 = vld [vmem:[%s463_s1 + $0x78] sm:$0xff]  ;;  %v21_v36 = vld [vmem:[%s463_s1 + $0x48] sm:$0xff] }
   0xd   :  { %96 = vmatpush1.msra.mxu0 %v36_v22  ;;  %167 = vmatpush1.msra.mxu1 %v38_v25  ;;  %v26_v37 = vld [vmem:[%s463_s1 + $0x70] sm:$0xff]  ;;  %v20_v38 = vld [vmem:[%s463_s1 + $0x40] sm:$0xff]  ;;  %v23_v39 = vld [vmem:[%s463_s1 + $0x58] sm:$0xff] }
   0xe   :  { %97 = vmatprep.subr.mxu0 %v33_v24  ;;  %168 = vmatprep.subr.mxu1 %v35_v27  ;;  %v17_v40 = vld [vmem:[%s463_s1 + $0x28] sm:$0xff]  ;;  %v22_v41 = vld [vmem:[%s463_s1 + $0x50] sm:$0xff]  ;;  %v16_v42 = vld [vmem:[%s463_s1 + $0x20] sm:$0xff] }
   0xf   :  { %98 = vmatpush1.msra.mxu0 %v32_v26  ;;  %169 = vmatpush1.msra.mxu1 %v34_v29  ;;  %v19_v43 = vld [vmem:[%s463_s1 + $0x38] sm:$0xff]  ;;  %v13_v44 = vld [vmem:[%s463_s1 + $0x8] sm:$0xff]  ;;  %v18_v45 = vld [vmem:[%s463_s1 + $0x30] sm:$0xff] }
  0x10   :  { %99 = vmatprep.subr.mxu0 %v29_v28  ;;  %170 = vmatprep.subr.mxu1 %v31_v31  ;;  %v12_v46 = vld [vmem:[%s463_s1] sm:$0xff]  ;;  %v15_v47 = vld [vmem:[%s463_s1 + $0x18] sm:$0xff]  ;;  %v14_v49 = vld [vmem:[%s463_s1 + $0x10] sm:$0xff] }
  0x11   :  { %100 = vmatpush1.msra.mxu0 %v28_v30  ;;  %171 = vmatpush1.msra.mxu1 %v30_v33  ;;  %v11_v48 = vld [vmem:[%s464_s0] sm:$0xf] }
  0x12   :  { %101 = vmatprep.subr.mxu0 %v25_v32  ;;  %172 = vmatprep.subr.mxu1 %v27_v35 }
  0x13   :  { %102 = vmatpush1.msra.mxu0 %v24_v34  ;;  %173 = vmatpush1.msra.mxu1 %v26_v37 }
  0x14   :  { %103 = vmatprep.subr.mxu0 %v21_v36  ;;  %174 = vmatprep.subr.mxu1 %v23_v39 }
  0x15   :  { %104 = vmatpush1.msra.mxu0 %v20_v38  ;;  %175 = vmatpush1.msra.mxu1 %v22_v41 }
  0x16   :  { %105 = vmatprep.subr.mxu0 %v17_v40  ;;  %176 = vmatprep.subr.mxu1 %v19_v43 }
  0x17   :  { %106 = vmatpush1.msra.mxu0 %v16_v42  ;;  %177 = vmatpush1.msra.mxu1 %v18_v45 }
  0x18   :  { %107 = vmatprep.subr.mxu0 %v13_v44  ;;  %178 = vmatprep.subr.mxu1 %v15_v47 }
  0x19   :  { %108 = vmatpush1.msra.mxu0 %v12_v46  ;;  %179 = vmatpush1.msra.mxu1 %v14_v49 }
  0x1a   :  { %275 = vmatmul.mubr.msk.f32.vlgmr.msra.gmra.mxu0 %vm60_vm1, %v11_v48  ;;  %278 = vmatmul.mubr.msk.f32.vlgmr.msra.gmra.mxu1 %vm60_vm1, %v11_v48 }
  0xda   :  { %v143_v50 = vpop.f32.mrf.mxu0  ;;  %v214_v51 = vpop.f32.mrf.mxu1 }
  0xdb   :  { %v220_v53 = vsel %vm219_vm2, %v143_v50, 0.0  ;;  %v223_v55 = vsel %vm219_vm2, %v214_v51, 0.0 }
  0xdc   :  { %v145_v52 = vpop.f32.mrf.mxu0  ;;  %v216_v57 = vpop.f32.mrf.mxu1 }
  0xdd   :  { %v221_v54 = vsel %vm219_vm2, %v145_v52, 0.0  ;;  %v225_v59 = vsel %vm219_vm2, %v216_v57, 0.0 }
  0xde   :  { %v222_v56 = vadd.f32 %v221_v54, %v220_v53 }
  0xe0   :  { %v224_v58 = vadd.f32 %v223_v55, %v222_v56 }
  0xe2   :  { %v226_v60 = vadd.f32 %v225_v59, %v224_v58 }
  0xe4   :  { %227 = vadd.xlane.f32.xlu0 %v226_v60 }
 0x16d   :  { %v228_v61 = vpop.xlane.xlu0 %227 }
 0x16e   :  { %v230_v62 = vmul.f32 0.001953125, %v228_v61 }
 0x170   :  { %v231_v63 = vsub.f32 %v143_v50, %v230_v62  ;;  %v232_v0 = vsub.f32 %v145_v52, %v230_v62  ;;  %v233_v1 = vsub.f32 %v214_v51, %v230_v62  ;;  %v234_v2 = vsub.f32 %v216_v57, %v230_v62 }
 0x172   :  { %v235_v3 = vmul.f32 %v231_v63, %v231_v63  ;;  %v236_v4 = vmul.f32 %v232_v0, %v232_v0  ;;  %v237_v5 = vmul.f32 %v233_v1, %v233_v1  ;;  %v238_v6 = vmul.f32 %v234_v2, %v234_v2 }
 0x174   :  { %v239_v7 = vsel %vm219_vm2, %v235_v3, 0.0  ;;  %v240_v8 = vsel %vm219_vm2, %v236_v4, 0.0  ;;  %v242_v10 = vsel %vm219_vm2, %v237_v5, 0.0  ;;  %v244_v12 = vsel %vm219_vm2, %v238_v6, 0.0 }
 0x175   :  { %v241_v9 = vadd.f32 %v240_v8, %v239_v7 }
 0x177   :  { %v243_v11 = vadd.f32 %v242_v10, %v241_v9 }
 0x179   :  { %v245_v13 = vadd.f32 %v244_v12, %v243_v11 }
 0x17b   :  { %246 = vadd.xlane.f32.xlu0 %v245_v13 }
 0x204   :  { %v247_v14 = vpop.xlane.xlu0 %246 }
 0x205   :  { %v248_v15 = vmul.f32 0.001953125, %v247_v14 }
 0x207   :  { %v249_v16 = vadd.f32 1e-05, %v248_v15 }
 0x209   :  { %280 = vrsqrt.f32 %v249_v16 }
 0x216   :  { %v281_v17 = vpop.eup %280 }
 0x217   :  { %v251_v18 = vmul.f32 %v281_v17, %v231_v63  ;;  %v252_v19 = vmul.f32 %v281_v17, %v232_v0  ;;  %v253_v20 = vmul.f32 %v281_v17, %v233_v1  ;;  %v254_v21 = vmul.f32 %v281_v17, %v234_v2 }
 0x219   :  { %v255_v22 = vmax.f32 %v251_v18, 0.0  ;;  %v256_v23 = vmax.f32 %v252_v19, 0.0  ;;  %v257_v24 = vmax.f32 %v253_v20, 0.0  ;;  %v258_v25 = vmax.f32 %v254_v21, 0.0 }
 0x21b   :  { %v263_v26 = vcombine.low %v255_v22, %v256_v23  ;;  %v264_v27 = vcombine.low %v257_v24, %v258_v25 }
 0x21d   :  { %267 = vst [vmem:[%s465_s2] sm:$0xff] %v263_v26  ;;  %268 = vst [vmem:[%s465_s2 + $0x8] sm:$0xff] %v264_v27 }

// kernel: convnet_forward.5
= control target key start
LH: loop header
LB: loop body
LE: loop exit
PB: predicated region body
PF: predicated region fallthrough
CT: control target
= control target key end

     0   :  { %vm109_vm0 = vcmask 1043456   ;;  %vm106_vm1 = vcmask 424960   ;;  %s640_s1 = inlined_call_operand.vmem [shape: f32[180,512], index: 1, kind: input, shape index: {}]   ;;  %s641_s0 = inlined_call_operand.vmem [shape: f32[4,180], index: 0, kind: input, shape index: {}]   ;;  %s642_s2 = inlined_call_operand.vmem [shape: f32[4,512], index: 2, kind: output, shape index: {}]  }
   0x1   :  { %v73_v0 = vld [vmem:[%s640_s1 + $0x1e8] sm:$0xff]  ;;  %v72_v1 = vld [vmem:[%s640_s1 + $0x1e0] sm:$0xff]  ;;  %v75_v3 = vld [vmem:[%s640_s1 + $0x1f8] sm:$0xff] }
   0x2   :  { %v69_v2 = vld [vmem:[%s640_s1 + $0x1c8] sm:$0xff]  ;;  %122 = vmatprep.subr.mxu0 %v73_v0  ;;  %v68_v4 = vld [vmem:[%s640_s1 + $0x1c0] sm:$0xff]  ;;  %v74_v5 = vld [vmem:[%s640_s1 + $0x1f0] sm:$0xff]  ;;  %193 = vmatprep.subr.mxu1 %v75_v3 }
   0x3   :  { %123 = vmatpush1.msra.mxu0 %v72_v1  ;;  %v65_v6 = vld [vmem:[%s640_s1 + $0x1a8] sm:$0xff]  ;;  %v71_v7 = vld [vmem:[%s640_s1 + $0x1d8] sm:$0xff]  ;;  %194 = vmatpush1.msra.mxu1 %v74_v5  ;;  %v64_v8 = vld [vmem:[%s640_s1 + $0x1a0] sm:$0xff] }
   0x4   :  { %124 = vmatprep.subr.mxu0 %v69_v2  ;;  %v70_v9 = vld [vmem:[%s640_s1 + $0x1d0] sm:$0xff]  ;;  %v67_v10 = vld [vmem:[%s640_s1 + $0x1b8] sm:$0xff]  ;;  %195 = vmatprep.subr.mxu1 %v71_v7  ;;  %v61_v11 = vld [vmem:[%s640_s1 + $0x188] sm:$0xff] }
   0x5   :  { %125 = vmatpush1.msra.mxu0 %v68_v4  ;;  %v66_v12 = vld [vmem:[%s640_s1 + $0x1b0] sm:$0xff]  ;;  %196 = vmatpush1.msra.mxu1 %v70_v9  ;;  %v60_v13 = vld [vmem:[%s640_s1 + $0x180] sm:$0xff]  ;;  %v63_v14 = vld [vmem:[%s640_s1 + $0x198] sm:$0xff] }
   0x6   :  { %126 = vmatprep.subr.mxu0 %v65_v6  ;;  %197 = vmatprep.subr.mxu1 %v67_v10  ;;  %v57_v15 = vld [vmem:[%s640_s1 + $0x168] sm:$0xff]  ;;  %v62_v16 = vld [vmem:[%s640_s1 + $0x190] sm:$0xff]  ;;  %v56_v17 = vld [vmem:[%s640_s1 + $0x160] sm:$0xff] }
   0x7   :  { %127 = vmatpush1.msra.mxu0 %v64_v8  ;;  %198 = vmatpush1.msra.mxu1 %v66_v12  ;;  %v59_v18 = vld [vmem:[%s640_s1 + $0x178] sm:$0xff]  ;;  %v53_v19 = vld [vmem:[%s640_s1 + $0x148] sm:$0xff]  ;;  %v58_v20 = vld [vmem:[%s640_s1 + $0x170] sm:$0xff] }
   0x8   :  { %128 = vmatprep.subr.mxu0 %v61_v11  ;;  %199 = vmatprep.subr.mxu1 %v63_v14  ;;  %v52_v21 = vld [vmem:[%s640_s1 + $0x140] sm:$0xff]  ;;  %v55_v22 = vld [vmem:[%s640_s1 + $0x158] sm:$0xff]  ;;  %v49_v23 = vld [vmem:[%s640_s1 + $0x128] sm:$0xff] }
   0x9   :  { %129 = vmatpush1.msra.mxu0 %v60_v13  ;;  %200 = vmatpush1.msra.mxu1 %v62_v16  ;;  %v54_v24 = vld [vmem:[%s640_s1 + $0x150] sm:$0xff]  ;;  %v48_v25 = vld [vmem:[%s640_s1 + $0x120] sm:$0xff]  ;;  %v51_v26 = vld [vmem:[%s640_s1 + $0x138] sm:$0xff] }
   0xa   :  { %130 = vmatprep.subr.mxu0 %v57_v15  ;;  %201 = vmatprep.subr.mxu1 %v59_v18  ;;  %v45_v27 = vld [vmem:[%s640_s1 + $0x108] sm:$0xff]  ;;  %v50_v28 = vld [vmem:[%s640_s1 + $0x130] sm:$0xff]  ;;  %v44_v29 = vld [vmem:[%s640_s1 + $0x100] sm:$0xff] }
   0xb   :  { %131 = vmatpush1.msra.mxu0 %v56_v17  ;;  %202 = vmatpush1.msra.mxu1 %v58_v20  ;;  %v47_v30 = vld [vmem:[%s640_s1 + $0x118] sm:$0xff]  ;;  %v41_v31 = vld [vmem:[%s640_s1 + $0xe8] sm:$0xff]  ;;  %v46_v32 = vld [vmem:[%s640_s1 + $0x110] sm:$0xff] }
   0xc   :  { %132 = vmatprep.subr.mxu0 %v53_v19  ;;  %203 = vmatprep.subr.mxu1 %v55_v22  ;;  %v40_v33 = vld [vmem:[%s640_s1 + $0xe0] sm:$0xff]  ;;  %v43_v34 = vld [vmem:[%s640_s1 + $0xf8] sm:$0xff]  ;;  %v37_v35 = vld [vmem:[%s640_s1 + $0xc8] sm:$0xff] }
   0xd   :  { %133 = vmatpush1.msra.mxu0 %v52_v21  ;;  %204 = vmatpush1.msra.mxu1 %v54_v24  ;;  %v42_v36 = vld [vmem:[%s640_s1 + $0xf0] sm:$0xff]  ;;  %v36_v37 = vld [vmem:[%s640_s1 + $0xc0] sm:$0xff]  ;;  %v39_v38 = vld [vmem:[%s640_s1 + $0xd8] sm:$0xff] }
   0xe   :  { %134 = vmatprep.subr.mxu0 %v49_v23  ;;  %205 = vmatprep.subr.mxu1 %v51_v26  ;;  %v33_v39 = vld [vmem:[%s640_s1 + $0xa8] sm:$0xff]  ;;  %v38_v40 = vld [vmem:[%s640_s1 + $0xd0] sm:$0xff]  ;;  %v32_v41 = vld [vmem:[%s640_s1 + $0xa0] sm:$0xff] }
   0xf   :  { %135 = vmatpush1.msra.mxu0 %v48_v25  ;;  %206 = vmatpush1.msra.mxu1 %v50_v28  ;;  %v35_v42 = vld [vmem:[%s640_s1 + $0xb8] sm:$0xff]  ;;  %v29_v43 = vld [vmem:[%s640_s1 + $0x88] sm:$0xff]  ;;  %v34_v44 = vld [vmem:[%s640_s1 + $0xb0] sm:$0xff] }
  0x10   :  { %136 = vmatprep.subr.mxu0 %v45_v27  ;;  %207 = vmatprep.subr.mxu1 %v47_v30  ;;  %v28_v45 = vld [vmem:[%s640_s1 + $0x80] sm:$0xff]  ;;  %v31_v46 = vld [vmem:[%s640_s1 + $0x98] sm:$0xff]  ;;  %v25_v47 = vld [vmem:[%s640_s1 + $0x68] sm:$0xff] }
  0x11   :  { %137 = vmatpush1.msra.mxu0 %v44_v29  ;;  %208 = vmatpush1.msra.mxu1 %v46_v32  ;;  %v30_v48 = vld [vmem:[%s640_s1 + $0x90] sm:$0xff]  ;;  %v24_v49 = vld [vmem:[%s640_s1 + $0x60] sm:$0xff]  ;;  %v27_v50 = vld [vmem:[%s640_s1 + $0x78] sm:$0xff] }
  0x12   :  { %138 = vmatprep.subr.mxu0 %v41_v31  ;;  %209 = vmatprep.subr.mxu1 %v43_v34  ;;  %v21_v51 = vld [vmem:[%s640_s1 + $0x48] sm:$0xff]  ;;  %v26_v52 = vld [vmem:[%s640_s1 + $0x70] sm:$0xff]  ;;  %v20_v53 = vld [vmem:[%s640_s1 + $0x40] sm:$0xff] }
  0x13   :  { %139 = vmatpush1.msra.mxu0 %v40_v33  ;;  %210 = vmatpush1.msra.mxu1 %v42_v36  ;;  %v23_v54 = vld [vmem:[%s640_s1 + $0x58] sm:$0xff]  ;;  %v17_v55 = vld [vmem:[%s640_s1 + $0x28] sm:$0xff]  ;;  %v22_v56 = vld [vmem:[%s640_s1 + $0x50] sm:$0xff] }
  0x14   :  { %140 = vmatprep.subr.mxu0 %v37_v35  ;;  %211 = vmatprep.subr.mxu1 %v39_v38  ;;  %v16_v57 = vld [vmem:[%s640_s1 + $0x20] sm:$0xff]  ;;  %v19_v58 = vld [vmem:[%s640_s1 + $0x38] sm:$0xff]  ;;  %v13_v59 = vld [vmem:[%s640_s1 + $0x8] sm:$0xff] }
  0x15   :  { %141 = vmatpush1.msra.mxu0 %v36_v37  ;;  %212 = vmatpush1.msra.mxu1 %v38_v40  ;;  %v18_v60 = vld [vmem:[%s640_s1 + $0x30] sm:$0xff]  ;;  %v12_v61 = vld [vmem:[%s640_s1] sm:$0xff]  ;;  %v15_v62 = vld [vmem:[%s640_s1 + $0x18] sm:$0xff] }
  0x16   :  { %142 = vmatprep.subr.mxu0 %v33_v39  ;;  %213 = vmatprep.subr.mxu1 %v35_v42  ;;  %v101_v63 = vld [vmem:[%s640_s1 + $0x2c8] sm:$0xf]  ;;  %v14_v0 = vld [vmem:[%s640_s1 + $0x10] sm:$0xff]  ;;  %v100_v1 = vld [vmem:[%s640_s1 + $0x2c0] sm:$0xf] }
  0x17   :  { %143 = vmatpush1.msra.mxu0 %v32_v41  ;;  %214 = vmatpush1.msra.mxu1 %v34_v44  ;;  %v103_v2 = vld [vmem:[%s640_s1 + $0x2d8] sm:$0xf]  ;;  %v97_v3 = vld [vmem:[%s640_s1 + $0x2a8] sm:$0xff]  ;;  %v102_v4 = vld [vmem:[%s640_s1 + $0x2d0] sm:$0xf] }
  0x18   :  { %144 = vmatprep.subr.mxu0 %v29_v43  ;;  %215 = vmatprep.subr.mxu1 %v31_v46  ;;  %v96_v5 = vld [vmem:[%s640_s1 + $0x2a0] sm:$0xff]  ;;  %v99_v6 = vld [vmem:[%s640_s1 + $0x2b8] sm:$0xff]  ;;  %v93_v7 = vld [vmem:[%s640_s1 + $0x288] sm:$0xff] }
  0x19   :  { %145 = vmatpush1.msra.mxu0 %v28_v45  ;;  %216 = vmatpush1.msra.mxu1 %v30_v48  ;;  %v98_v8 = vld [vmem:[%s640_s1 + $0x2b0] sm:$0xff]  ;;  %v92_v9 = vld [vmem:[%s640_s1 + $0x280] sm:$0xff]  ;;  %v95_v10 = vld [vmem:[%s640_s1 + $0x298] sm:$0xff] }
  0x1a   :  { %146 = vmatprep.subr.mxu0 %v25_v47  ;;  %217 = vmatprep.subr.mxu1 %v27_v50  ;;  %v89_v11 = vld [vmem:[%s640_s1 + $0x268] sm:$0xff]  ;;  %v94_v12 = vld [vmem:[%s640_s1 + $0x290] sm:$0xff]  ;;  %v88_v13 = vld [vmem:[%s640_s1 + $0x260] sm:$0xff] }
  0x1b   :  { %147 = vmatpush1.msra.mxu0 %v24_v49  ;;  %218 = vmatpush1.msra.mxu1 %v26_v52  ;;  %v91_v14 = vld [vmem:[%s640_s1 + $0x278] sm:$0xff]  ;;  %v85_v15 = vld [vmem:[%s640_s1 + $0x248] sm:$0xff]  ;;  %v90_v16 = vld [vmem:[%s640_s1 + $0x270] sm:$0xff] }
  0x1c   :  { %148 = vmatprep.subr.mxu0 %v21_v51  ;;  %219 = vmatprep.subr.mxu1 %v23_v54  ;;  %v11_v17 = vld [vmem:[%s641_s0] sm:$0xff]  ;;  %v87_v19 = vld [vmem:[%s640_s1 + $0x258] sm:$0xff]  ;;  %v81_v20 = vld [vmem:[%s640_s1 + $0x228] sm:$0xff] }
  0x1d   :  { %149 = vmatpush1.msra.mxu0 %v20_v53  ;;  %220 = vmatpush1.msra.mxu1 %v22_v56  ;;  %v84_v18 = vld [vmem:[%s640_s1 + $0x240] sm:$0xff]  ;;  %v86_v21 = vld [vmem:[%s640_s1 + $0x250] sm:$0xff]  ;;  %v83_v23 = vld [vmem:[%s640_s1 + $0x238] sm:$0xff]  ;;  %v105_v24 = vcombine.high %v11_v17, %v11_v17 }
  0x1e   :  { %150 = vmatprep.subr.mxu0 %v17_v55  ;;  %221 = vmatprep.subr.mxu1 %v19_v58  ;;  %v80_v22 = vld [vmem:[%s640_s1 + $0x220] sm:$0xff]  ;;  %v77_v25 = vld [vmem:[%s640_s1 + $0x208] sm:$0xff]  ;;  %v82_v27 = vld [vmem:[%s640_s1 + $0x230] sm:$0xff] }
  0x1f   :  { %151 = vmatpush1.msra.mxu0 %v16_v57  ;;  %222 = vmatpush1.msra.mxu1 %v18_v60  ;;  %v76_v26 = vld [vmem:[%s640_s1 + $0x200] sm:$0xff]  ;;  %v79_v28 = vld [vmem:[%s640_s1 + $0x218] sm:$0xff]  ;;  %v78_v29 = vld [vmem:[%s640_s1 + $0x210] sm:$0xff] }
  0x20   :  { %152 = vmatprep.subr.mxu0 %v13_v59  ;;  %223 = vmatprep.subr.mxu1 %v15_v62 }
  0x21   :  { %153 = vmatpush1.msra.mxu0 %v12_v61  ;;  %224 = vmatpush1.msra.mxu1 %v14_v0 }
  0x22   :  { %317 = vmatprep.subr.msk.mxu0 %vm109_vm0, %v101_v63  ;;  %320 = vmatprep.subr.msk.mxu1 %vm109_vm0, %v103_v2 }
  0x23   :  { %318 = vmatpush2.msk.msra.mxu0 %vm109_vm0, %v100_v1  ;;  %321 = vmatpush2.msk.msra.mxu1 %vm109_vm0, %v102_v4 }
  0x24   :  { %174 = vmatprep.subr.mxu0 %v97_v3  ;;  %245 = vmatprep.subr.mxu1 %v99_v6 }
  0x25   :  { %175 = vmatpush2.msra.mxu0 %v96_v5  ;;  %246 = vmatpush2.msra.mxu1 %v98_v8 }
  0x26   :  { %176 = vmatprep.subr.mxu0 %v93_v7  ;;  %247 = vmatprep.subr.mxu1 %v95_v10 }
  0x27   :  { %177 = vmatpush2.msra.mxu0 %v92_v9  ;;  %248 = vmatpush2.msra.mxu1 %v94_v12 }
  0x28   :  { %178 = vmatprep.subr.mxu0 %v89_v11  ;;  %249 = vmatprep.subr.mxu1 %v91_v14 }
  0x29   :  { %179 = vmatpush2.msra.mxu0 %v88_v13  ;;  %250 = vmatpush2.msra.mxu1 %v90_v16 }
  0x2a   :  { %180 = vmatprep.subr.mxu0 %v85_v15  ;;  %251 = vmatprep.subr.mxu1 %v87_v19 }
  0x2b   :  { %181 = vmatpush2.msra.mxu0 %v84_v18  ;;  %252 = vmatpush2.msra.mxu1 %v86_v21 }
  0x2c   :  { %182 = vmatprep.subr.mxu0 %v81_v20  ;;  %253 = vmatprep.subr.mxu1 %v83_v23 }
  0x2d   :  { %183 = vmatpush2.msra.mxu0 %v80_v22  ;;  %319 = vmatprep.mubr.msk.f32.mxu0 %vm106_vm1, %v105_v24 }
  0x2e   :  { %184 = vmatprep.subr.mxu0 %v77_v25  ;;  %254 = vmatpush2.msra.mxu1 %v82_v27 }
  0x2f   :  { %185 = vmatpush2.msra.mxu0 %v76_v26  ;;  %255 = vmatprep.subr.mxu1 %v79_v28 }
  0x30   :  { %187 = vmatmul.mubr.f32.vlgmr.msra.gmra.mxu0 %v11_v17  ;;  %256 = vmatpush2.msra.mxu1 %v78_v29 }
  0x31   :  { %322 = vmatprep.mubr.msk.f32.mxu1 %vm106_vm1, %v105_v24 }
  0x32   :  { %258 = vmatmul.mubr.f32.vlgmr.msra.gmra.mxu1 %v11_v17 }
  0xf0   :  { %v188_v30 = vpop.f32.mrf.mxu0 }
  0xf1   :  { %v264_v33 = vsel %vm109_vm0, %v188_v30, 0.0 }
  0xf2   :  { %v190_v31 = vpop.f32.mrf.mxu0  ;;  %v259_v32 = vpop.f32.mrf.mxu1 }
  0xf3   :  { %v265_v34 = vsel %vm109_vm0, %v190_v31, 0.0  ;;  %v267_v35 = vsel %vm109_vm0, %v259_v32, 0.0 }
  0xf4   :  { %v266_v36 = vadd.f32 %v265_v34, %v264_v33  ;;  %v261_v37 = vpop.f32.mrf.mxu1 }
  0xf5   :  { %v269_v39 = vsel %vm109_vm0, %v261_v37, 0.0 }
  0xf6   :  { %v268_v38 = vadd.f32 %v267_v35, %v266_v36 }
  0xf8   :  { %v270_v40 = vadd.f32 %v269_v39, %v268_v38 }
  0xfa   :  { %271 = vadd.xlane.f32.xlu0 %v270_v40 }
 0x183   :  { %v272_v41 = vpop.xlane.xlu0 %271 }
 0x184   :  { %v274_v42 = vmul.f32 0.001953125, %v272_v41 }
 0x186   :  { %v275_v43 = vsub.f32 %v188_v30, %v274_v42  ;;  %v276_v44 = vsub.f32 %v190_v31, %v274_v42  ;;  %v277_v45 = vsub.f32 %v259_v32, %v274_v42  ;;  %v278_v46 = vsub.f32 %v261_v37, %v274_v42 }
 0x188   :  { %v279_v47 = vmul.f32 %v275_v43, %v275_v43  ;;  %v280_v48 = vmul.f32 %v276_v44, %v276_v44  ;;  %v281_v49 = vmul.f32 %v277_v45, %v277_v45  ;;  %v282_v50 = vmul.f32 %v278_v46, %v278_v46 }
 0x18a   :  { %v283_v51 = vsel %vm109_vm0, %v279_v47, 0.0  ;;  %v284_v52 = vsel %vm109_vm0, %v280_v48, 0.0  ;;  %v286_v54 = vsel %vm109_vm0, %v281_v49, 0.0  ;;  %v288_v56 = vsel %vm109_vm0, %v282_v50, 0.0 }
 0x18b   :  { %v285_v53 = vadd.f32 %v284_v52, %v283_v51 }
 0x18d   :  { %v287_v55 = vadd.f32 %v286_v54, %v285_v53 }
 0x18f   :  { %v289_v57 = vadd.f32 %v288_v56, %v287_v55 }
 0x191   :  { %290 = vadd.xlane.f32.xlu0 %v289_v57 }
 0x21a   :  { %v291_v58 = vpop.xlane.xlu0 %290 }
 0x21b   :  { %v292_v59 = vmul.f32 0.001953125, %v291_v58 }
 0x21d   :  { %v293_v60 = vadd.f32 1e-05, %v292_v59 }
 0x21f   :  { %324 = vrsqrt.f32 %v293_v60 }
 0x22c   :  { %v325_v61 = vpop.eup %324 }
 0x22d   :  { %v295_v62 = vmul.f32 %v325_v61, %v275_v43  ;;  %v296_v63 = vmul.f32 %v325_v61, %v276_v44  ;;  %v297_v0 = vmul.f32 %v325_v61, %v277_v45  ;;  %v298_v1 = vmul.f32 %v325_v61, %v278_v46 }
 0x22f   :  { %v299_v2 = vmax.f32 %v295_v62, 0.0  ;;  %v300_v3 = vmax.f32 %v296_v63, 0.0  ;;  %v301_v4 = vmax.f32 %v297_v0, 0.0  ;;  %v302_v5 = vmax.f32 %v298_v1, 0.0 }
 0x231   :  { %v307_v6 = vcombine.low %v299_v2, %v300_v3  ;;  %v308_v7 = vcombine.low %v301_v4, %v302_v5 }
 0x233   :  { %311 = vst [vmem:[%s642_s2] sm:$0xff] %v307_v6  ;;  %312 = vst [vmem:[%s642_s2 + $0x8] sm:$0xff] %v308_v7 }

// kernel: convnet_forward.6
= control target key start
LH: loop header
LB: loop body
LE: loop exit
PB: predicated region body
PF: predicated region fallthrough
CT: control target
= control target key end

     0   :  { %v127_v0 = vmov 0.0   ;;  %vm31_vm0 = vcmask 130048   ;;  %s206_s1 = inlined_call_operand.vmem [shape: f32[144,128], index: 1, kind: input, shape index: {}]   ;;  %s207_s0 = inlined_call_operand.vmem [shape: f32[8,144], index: 0, kind: input, shape index: {}]   ;;  %s208_s2 = inlined_call_operand.vmem [shape: f32[8,128], index: 2, kind: output, shape index: {}]  }
   0x1   :  { %35 = vmatprep.subr.mxu0 %v127_v0  ;;  %v28_v1 = vld [vmem:[%s206_s1 + $0x78] sm:$0xff]  ;;  %v27_v2 = vld [vmem:[%s206_s1 + $0x70] sm:$0xff]  ;;  %v26_v3 = vld [vmem:[%s206_s1 + $0x68] sm:$0xff] }
   0x2   :  { %36 = vmatpush1.msra.mxu0 %v28_v1  ;;  %v25_v4 = vld [vmem:[%s206_s1 + $0x60] sm:$0xff]  ;;  %v24_v5 = vld [vmem:[%s206_s1 + $0x58] sm:$0xff]  ;;  %v12_v6 = vld [vmem:[%s207_s0 + $0x8] sm:$0xff] }
   0x3   :  { %37 = vmatprep.subr.mxu0 %v127_v0  ;;  %123 = vmatprep.mubr.msk.f32.mxu0 %vm31_vm0, %v12_v6  ;;  %v23_v7 = vld [vmem:[%s206_s1 + $0x50] sm:$0xff]  ;;  %v22_v8 = vld [vmem:[%s206_s1 + $0x48] sm:$0xff]  ;;  %v21_v9 = vld [vmem:[%s206_s1 + $0x40] sm:$0xff] }
   0x4   :  { %38 = vmatpush1.msra.mxu0 %v27_v2  ;;  %v20_v10 = vld [vmem:[%s206_s1 + $0x38] sm:$0xff]  ;;  %v19_v11 = vld [vmem:[%s206_s1 + $0x30] sm:$0xff]  ;;  %v18_v12 = vld [vmem:[%s206_s1 + $0x28] sm:$0xff] }
   0x5   :  { %39 = vmatprep.subr.mxu0 %v127_v0  ;;  %v17_v13 = vld [vmem:[%s206_s1 + $0x20] sm:$0xff]  ;;  %v16_v14 = vld [vmem:[%s206_s1 + $0x18] sm:$0xff]  ;;  %v15_v15 = vld [vmem:[%s206_s1 + $0x10] sm:$0xff] }
   0x6   :  { %40 = vmatpush1.msra.mxu0 %v26_v3  ;;  %v14_v16 = vld [vmem:[%s206_s1 + $0x8] sm:$0xff]  ;;  %v13_v17 = vld [vmem:[%s206_s1] sm:$0xff] }
   0x7   :  { %41 = vmatprep.subr.mxu0 %v127_v0  ;;  %v30_v18 = vld [vmem:[%s206_s1 + $0x88] sm:$0xff]  ;;  %v29_v19 = vld [vmem:[%s206_s1 + $0x80] sm:$0xff] }
   0x8   :  { %42 = vmatpush1.msra.mxu0 %v25_v4  ;;  %v11_v20 = vld [vmem:[%s207_s0] sm:$0xff] }
   0x9   :  { %43 = vmatprep.subr.mxu0 %v127_v0 }
   0xa   :  { %44 = vmatpush1.msra.mxu0 %v24_v5 }
   0xb   :  { %45 = vmatprep.subr.mxu0 %v127_v0 }
   0xc   :  { %46 = vmatpush1.msra.mxu0 %v23_v7 }
   0xd   :  { %47 = vmatprep.subr.mxu0 %v127_v0 }
   0xe   :  { %48 = vmatpush1.msra.mxu0 %v22_v8 }
   0xf   :  { %49 = vmatprep.subr.mxu0 %v127_v0 }
  0x10   :  { %50 = vmatpush1.msra.mxu0 %v21_v9 }
  0x11   :  { %51 = vmatprep.subr.mxu0 %v127_v0 }
  0x12   :  { %52 = vmatpush1.msra.mxu0 %v20_v10 }
  0x13   :  { %53 = vmatprep.subr.mxu0 %v127_v0 }
  0x14   :  { %54 = vmatpush1.msra.mxu0 %v19_v11 }
  0x15   :  { %55 = vmatprep.subr.mxu0 %v127_v0 }
  0x16   :  { %56 = vmatpush1.msra.mxu0 %v18_v12 }
  0x17   :  { %57 = vmatprep.subr.mxu0 %v127_v0 }
  0x18   :  { %58 = vmatpush1.msra.mxu0 %v17_v13 }
  0x19   :  { %59 = vmatprep.subr.mxu0 %v127_v0 }
  0x1a   :  { %60 = vmatpush1.msra.mxu0 %v16_v14 }
  0x1b   :  { %61 = vmatprep.subr.mxu0 %v127_v0 }
  0x1c   :  { %62 = vmatpush1.msra.mxu0 %v15_v15 }
  0x1d   :  { %63 = vmatprep.subr.mxu0 %v127_v0 }
  0x1e   :  { %64 = vmatpush1.msra.mxu0 %v14_v16 }
  0x1f   :  { %65 = vmatprep.subr.mxu0 %v127_v0 }
  0x20   :  { %66 = vmatpush1.msra.mxu0 %v13_v17 }
  0x21   :  { %95 = vmatprep.subr.mxu0 %v127_v0 }
  0x22   :  { %96 = vmatpush2.msra.mxu0 %v30_v18 }
  0x23   :  { %97 = vmatprep.subr.mxu0 %v127_v0 }
  0x24   :  { %98 = vmatpush2.msra.mxu0 %v29_v19 }
  0x25   :  { %100 = vmatmul.mubr.f32.vlgmr.msra.gmra.mxu0 %v11_v20 }
  0xe5   :  { %v101_v21 = vpop.f32.mrf.mxu0 }
  0xe6   :  { %105 = vadd.xlane.f32.xlu0 %v101_v21 }
  0xe7   :  { %v103_v22 = vpop.f32.mrf.mxu0 }
 0x16f   :  { %v106_v23 = vpop.xlane.xlu0 %105 }
 0x170   :  { %v108_v24 = vmul.f32 0.0078125, %v106_v23 }
 0x172   :  { %v109_v25 = vsub.f32 %v101_v21, %v108_v24 }
 0x174   :  { %v110_v26 = vmul.f32 %v109_v25, %v109_v25 }
 0x176   :  { %111 = vadd.xlane.f32.xlu0 %v110_v26 }
 0x1ff   :  { %v112_v27 = vpop.xlane.xlu0 %111 }
 0x200   :  { %v113_v28 = vmul.f32 0.0078125, %v112_v27 }
 0x202   :  { %v114_v29 = vadd.f32 1e-05, %v113_v28 }
 0x204   :  { %125 = vrsqrt.f32 %v114_v29 }
 0x211   :  { %v126_v30 = vpop.eup %125 }
 0x212   :  { %v116_v31 = vmul.f32 %v126_v30, %v109_v25 }
 0x214   :  { %v117_v32 = vmax.f32 %v116_v31, 0.0 }
 0x216   :  { %118 = vst [vmem:[%s208_s2] sm:$0xff] %v117_v32 }

// kernel: convnet_forward.7
= control target key start
LH: loop header
LB: loop body
LE: loop exit
PB: predicated region body
PF: predicated region fallthrough
CT: control target
= control target key end

     0   :  { %vm24_vm0 = vcmask 64512   ;;  %v160_v0 = vmov 0.0   ;;  %vm161_vm1 = vmmov 0   ;;  %v162_v4 = vmov 0   ;;  %s207_s0 = inlined_call_operand.vmem [shape: f32[8,128], index: 0, kind: input, shape index: {}]   ;;  %s208_s1 = inlined_call_operand.vmem [shape: f32[3,8], index: 1, kind: input, shape index: {}]   ;;  %s209_s2 = inlined_call_operand.vmem [shape: f32[3,1], index: 2, kind: input, shape index: {}]   ;;  %s210_s3 = inlined_call_operand.vmem [shape: f32[3,128], index: 3, kind: output, shape index: {0}]   ;;  %s211_s4 = inlined_call_operand.vmem [shape: f32[3,128], index: 4, kind: output, shape index: {1}]  }
   0x1   :  { %145 = vmatprep.subr.mxu0 %v160_v0  ;;  %v17_v1 = vld [vmem:[%s207_s0] sm:$0xff]  ;;  %147 = vmatprep.mubr.msk.f32.mxu0 %vm161_vm1, %v160_v0  ;;  %vm98_vm2 = vcmask 1042432  }
   0x2   :  { %v16_v2 = vld [vmem:[%s208_s1] sm:$0x7]  ;;  %146 = vmatpush3.msra.mxu0 %v17_v1  ;;  %153 = vset.pattern.permute.xlu0 %v162_v4 }
   0x3   :  { %v18_v3 = vld [vmem:[%s209_s2] sm:$0x7]  ;;  %148 = vmatmul.mubr.msk.f32.vlgmr.msra.gmra.mxu0 %vm24_vm0, %v16_v2 }
   0x4   :  { %21 = vperm.xlu0 %153, %v18_v3  }
  0x7f   :  { %v22_v5 = vpop.permute.xlu0 %21 }
  0xc3   :  { %v94_v6 = vpop.f32.mrf.mxu0 }
  0xc4   :  { %v95_v7 = vadd.f32 %v94_v6, %v22_v5 }
  0xc5   :  { %v149_v8 = vpop.f32.mrf.mxu0 }
  0xc6   :  { %v99_v9 = vsel %vm98_vm2, %v95_v7, 0.0 }
  0xc7   :  { %100 = vadd.xlane.f32.xlu0 %v99_v9 }
 0x150   :  { %v101_v10 = vpop.xlane.xlu0 %100 }
 0x151   :  { %v103_v11 = vmul.f32 0.0078125, %v101_v10 }
 0x153   :  { %v104_v12 = vsub.f32 %v95_v7, %v103_v11 }
 0x155   :  { %v105_v13 = vmul.f32 %v104_v12, %v104_v12 }
 0x157   :  { %v106_v14 = vsel %vm98_vm2, %v105_v13, 0.0 }
 0x158   :  { %107 = vadd.xlane.f32.xlu1 %v106_v14 }
 0x1e1   :  { %v108_v15 = vpop.xlane.xlu1 %107 }
 0x1e2   :  { %v109_v16 = vmul.f32 0.0078125, %v108_v15 }
 0x1e4   :  { %v110_v17 = vadd.f32 1e-05, %v109_v16 }
 0x1e6   :  { %154 = vrsqrt.f32 %v110_v17 }
 0x1f3   :  { %v155_v18 = vpop.eup %154 }
 0x1f4   :  { %v112_v19 = vmul.f32 %v155_v18, %v104_v12 }
 0x1f6   :  { %113 = vst [vmem:[%s210_s3] sm:$0x7] %v112_v19  ;;  %v114_v20 = vsel %vm98_vm2, %v112_v19, -inf }
 0x1f7   :  { %v115_v21 = vrot.slane %v114_v20, 4 }
 0x1f9   :  { %v116_v22 = vmax.f32 %v114_v20, %v115_v21 }
 0x1fb   :  { %v117_v23 = vrot.slane %v116_v22, 2 }
 0x1fd   :  { %v118_v24 = vmax.f32 %v116_v22, %v117_v23 }
 0x1ff   :  { %v119_v25 = vrot.slane %v118_v24, 1 }
 0x201   :  { %v120_v26 = vmax.f32 %v118_v24, %v119_v25 }
 0x203   :  { %v121_v27 = vsub.f32 %v112_v19, %v120_v26 }
 0x205   :  { %v122_v28 = vmul.f32 1.442695, %v121_v27 }
 0x207   :  { %156 = vpow2.f32 %v122_v28 }
 0x214   :  { %v157_v29 = vpop.eup %156 }
 0x215   :  { %v124_v30 = vsel %vm98_vm2, %v157_v29, 0.0 }
 0x216   :  { %v125_v31 = vrot.slane %v124_v30, 4 }
 0x218   :  { %v126_v32 = vadd.f32 %v125_v31, %v124_v30 }
 0x21a   :  { %v127_v33 = vrot.slane %v126_v32, 2 }
 0x21c   :  { %v128_v34 = vadd.f32 %v127_v33, %v126_v32 }
 0x21e   :  { %v129_v35 = vrot.slane %v128_v34, 1 }
 0x220   :  { %v130_v36 = vadd.f32 %v129_v35, %v128_v34 }
 0x222   :  { %158 = vrcp.f32 %v130_v36 }
 0x22f   :  { %v159_v37 = vpop.eup %158 }
 0x230   :  { %v132_v38 = vmul.f32 %v159_v37, %v157_v29 }
 0x232   :  { %133 = vst [vmem:[%s211_s4] sm:$0x7] %v132_v38 }

</bundles_post_ra>
